<compile_context>
chip_gen: v5e
topology: v5e:2x2
jax: 0.10.0
libtpu: 0.0.40
codegen_flags: <defaults>
</compile_context>

<pallas_src>
import functools

import jax
import jax.numpy as jnp
from jax.experimental import pallas as pl
from jax.experimental.pallas import tpu as pltpu


def _mean_pooler_kernel(hs_ref, mask_ref, w_ref, b_ref, o_ref,
                        sum_sc, cnt_sc, *, use_sqrt):
    # hs_ref:   (TB, TS, D)  hidden-state slab (compute dtype: f32 or bf16)
    # mask_ref: (TB, TS)     matching mask tile (same compute dtype, pre-cast)
    # w_ref:    (D, D)       transposed Linear weight (D_in, D_out), resident
    # b_ref:    (1, D)       Linear bias (f32), resident
    # o_ref:    (TB, D)      output tile (lane-dense 2-D store)
    # sum_sc:   (TB, D) f32  running masked sums   (VMEM scratch)
    # cnt_sc:   (TB, 1) f32  running mask counts   (VMEM scratch)
    s = pl.program_id(1)

    @pl.when(s == 0)
    def _init():
        sum_sc[...] = jnp.zeros_like(sum_sc)
        cnt_sc[...] = jnp.zeros_like(cnt_sc)

    hs = hs_ref[...]                    # (TB, TS, D) — no full-tile upcast
    m = mask_ref[...]                   # (TB, TS)
    # Masked pooling on the VPU (multiply in input dtype, accumulate in f32).
    sum_sc[...] += jnp.sum(hs * m[:, :, None], axis=1, dtype=jnp.float32)
    cnt_sc[...] += jnp.sum(m, axis=1, keepdims=True, dtype=jnp.float32)

    @pl.when(s == pl.num_programs(1) - 1)
    def _finalize():
        cnt = cnt_sc[...]
        if use_sqrt:
            inv = jax.lax.rsqrt(cnt)    # EUP rsqrt: 1/sqrt(count)
        else:
            inv = 1.0 / cnt             # exact divide (parity with torch)
        pooled = sum_sc[...] * inv      # (TB, D) f32; all-zero mask -> inf/NaN (as torch)

        # Dropout: identity in eval mode.
        # Linear + ReLU: one MXU matmul per batch tile, single (TB, D) store.
        y = jnp.dot(pooled.astype(w_ref.dtype), w_ref[...],
                    preferred_element_type=jnp.float32)
        y = y + b_ref[...].astype(jnp.float32)
        o_ref[...] = jnp.maximum(y, 0.0).astype(o_ref.dtype)


def _vmem_capacity_bytes():
    try:
        cap = getattr(pltpu.get_tpu_info(), "vmem_capacity_bytes", None)
        if cap:
            return int(cap)
    except Exception:
        pass
    return 64 << 20  # conservative fallback (v7x per-TensorCore VMEM)


def _round_bb(bb, total_b):
    """Round a candidate batch tile to an MXU/sublane-friendly size."""
    if bb >= total_b:
        return total_b
    if bb >= 256:
        return (bb // 256) * 256
    if bb >= 128:
        return 128
    return max(8, (bb // 8) * 8)


def _footprint_bytes(bb, ts, D, hs_isz, m_isz, w_isz):
    """Rough VMEM footprint: double-buffered blocks + in-kernel temporaries."""
    hid = bb * ts * D * (3 * hs_isz + 4)       # 2x dbl-buf + product temp + f32 reduce temp
    msk = 2 * bb * max(ts, 128) * m_isz        # mask tiles (lane-padded)
    wgt = 2 * D * D * w_isz + 2 * 8 * D * 4    # replicated W^T + bias
    out = 2 * bb * D * 4                       # output tiles
    scr = bb * D * 4 + bb * 128 * 4            # f32 sum + count scratch
    return hid + msk + wgt + out + scr


def _choose_tiles(B, S, D, hs_isz, m_isz, w_isz, budget):
    # Batch tile: as large as VMEM allows (512 rows ~ 85% of HBM roofline),
    # but keep >=2 parallel grid steps when B allows it so the "parallel"
    # batch axis can shard across both TensorCores on v7x.
    if B < 16:
        bb = B
    else:
        bb = _round_bb(min(512, -(-B // 2)), B)
    ts = S
    while _footprint_bytes(bb, ts, D, hs_isz, m_isz, w_isz) > budget:
        if ts > 128:
            # Shrink the S (reduction) tile first — preserves large batch tiles.
            ts = max(128, ((ts // 2) // 128) * 128)
        elif bb > 8:
            bb = _round_bb(max(8, bb // 2), B)
        else:
            break  # run with minimal tiles anyway
    return bb, ts


def mean_pooler(hidden_states, mask, weight, bias, sqrt=True,
                block_b=None, block_s=None):
    """hidden_states: (B, S, D); mask: (B, S) any numeric dtype.

    weight: (D, D) torch-style Linear weight (out, in); bias: (D,).
    Returns (B, D) float32.
    """
    B, S, D = hidden_states.shape

    # Compute dtype: keep bf16 native (halves vreg/VALU traffic on v6e/v7x and
    # halves the resident W^T); everything else runs in f32. Accumulation over
    # S is always f32 inside the kernel.
    in_dt = hidden_states.dtype
    if in_dt == jnp.bfloat16 or in_dt == jnp.float32:
        compute_dt = in_dt
    else:
        compute_dt = jnp.float32
    hidden_states = hidden_states.astype(compute_dt)
    mask = mask.astype(compute_dt)              # pre-cast: no in-kernel int->float cast
    w_t = weight.T.astype(compute_dt)           # (D_in, D_out) so kernel does x @ W.T
    b2 = bias.reshape(1, D).astype(jnp.float32)

    # Device-aware VMEM budget (v5e/v6e: 128 MiB physical; v7x: 64 MiB per TC).
    cap = _vmem_capacity_bytes()
    if cap <= (64 << 20):
        budget = min(44 << 20, int(cap * 0.70))
    else:
        budget = min(96 << 20, int(cap * 0.75))

    hs_isz = jnp.dtype(compute_dt).itemsize
    bb, ts = _choose_tiles(B, S, D, hs_isz, hs_isz, hs_isz, budget)
    if block_b is not None:
        bb = min(block_b, B)
    if block_s is not None:
        ts = min(block_s, S)
    # TODO(synk): for very large D (>= ~2048), also tile the Linear output
    # dimension (W^T blocked as (D, TN)) instead of keeping the full weight
    # resident in VMEM.

    # Pad batch to a tile multiple. Padded rows carry an all-zero mask
    # (divisor 0 -> NaN, same as the PyTorch module) and are sliced off.
    n_b = -(-B // bb)
    Bp = n_b * bb
    # Pad sequence to a tile multiple; zero mask/hidden rows contribute nothing.
    n_s = -(-S // ts)
    Sp = n_s * ts
    if Bp != B or Sp != S:
        hidden_states = jnp.pad(hidden_states, ((0, Bp - B), (0, Sp - S), (0, 0)))
        mask = jnp.pad(mask, ((0, Bp - B), (0, Sp - S)))

    vmem_limit = int(min(cap - (8 << 20), budget + (16 << 20)))
    vmem_limit = max(vmem_limit, 32 << 20)

    kernel = functools.partial(_mean_pooler_kernel, use_sqrt=sqrt)
    out = pl.pallas_call(
        kernel,
        out_shape=jax.ShapeDtypeStruct((Bp, D), jnp.float32),
        grid_spec=pltpu.PrefetchScalarGridSpec(
            num_scalar_prefetch=0,
            grid=(n_b, n_s),
            in_specs=[
                pl.BlockSpec((bb, ts, D), lambda i, s: (i, s, 0)),  # hidden slab
                pl.BlockSpec((bb, ts), lambda i, s: (i, s)),        # mask tile
                pl.BlockSpec((D, D), lambda i, s: (0, 0)),          # W^T (resident)
                pl.BlockSpec((1, D), lambda i, s: (0, 0)),          # bias (resident)
            ],
            out_specs=pl.BlockSpec((bb, D), lambda i, s: (i, 0)),   # lane-dense 2-D
            scratch_shapes=[
                pltpu.VMEM((bb, D), jnp.float32),   # running masked sums
                pltpu.VMEM((bb, 1), jnp.float32),   # running mask counts
            ],
        ),
        compiler_params=pltpu.CompilerParams(
            dimension_semantics=("parallel", "arbitrary"),
            vmem_limit_bytes=vmem_limit,
        ),
    )(hidden_states, mask, w_t, b2)
    return out[:B] if Bp != B else out


def _reference(hidden_states, mask, weight, bias, sqrt=True):
    m_f = mask.astype(jnp.float32)
    sums = jnp.einsum("bsd,bs->bd", hidden_states.astype(jnp.float32), m_f)
    div = m_f.sum(axis=1, keepdims=True)
    if sqrt:
        div = jnp.sqrt(div)
    return jnp.maximum((sums / div) @ weight.T + bias, 0.0)


if __name__ == "__main__":
    key = jax.random.PRNGKey(0)

    # --- main small-shape check (config.d_model = 32, seq = 8, batch = 2) ---
    B, S, D = 2, 8, 32
    k_hs, k_mask, k_w, k_b, k2 = jax.random.split(key, 5)
    hidden_states = jax.random.normal(k_hs, (B, S, D), dtype=jnp.float32)
    mask = (jax.random.uniform(k_mask, (B, S)) > 0.3).astype(jnp.int32)
    mask = mask.at[:, 0].set(1)  # at least one valid token per row
    bound = 1.0 / jnp.sqrt(jnp.float32(D))
    weight = jax.random.uniform(k_w, (D, D), minval=-bound, maxval=bound,
                                dtype=jnp.float32)
    bias = jax.random.uniform(k_b, (D,), minval=-bound, maxval=bound,
                              dtype=jnp.float32)

    out = mean_pooler(hidden_states, mask, weight, bias, sqrt=True)
    jax.block_until_ready(out)
    ref = _reference(hidden_states, mask, weight, bias, sqrt=True)
    assert out.shape == (B, D)
    assert jnp.allclose(out, ref, atol=1e-5, rtol=1e-5)

    out2 = mean_pooler(hidden_states, mask, weight, bias, sqrt=False)
    jax.block_until_ready(out2)
    ref2 = _reference(hidden_states, mask, weight, bias, sqrt=False)
    assert jnp.allclose(out2, ref2, atol=1e-5, rtol=1e-5)

    # --- exercise batch-tile padding (bb < B, >=2 parallel tiles) and the
    # --- S-reduction grid axis (block_s override) at small shapes ----------
    B3, S3 = 20, 256
    k_hs3, k_mask3 = jax.random.split(k2)
    hs3 = jax.random.normal(k_hs3, (B3, S3, D), dtype=jnp.float32)
    mask3 = (jax.random.uniform(k_mask3, (B3, S3)) > 0.5).astype(jnp.int32)
    mask3 = mask3.at[:, 0].set(1)
    out3 = mean_pooler(hs3, mask3, weight, bias, sqrt=True, block_s=128)
    jax.block_until_ready(out3)
    ref3 = _reference(hs3, mask3, weight, bias, sqrt=True)
    assert out3.shape == (B3, D)
    assert jnp.allclose(out3, ref3, atol=1e-4, rtol=1e-4)

    print("KERNEL_OK")
</pallas_src>

<mosaic_0001>
module attributes {stable_mosaic.version = 11 : i64} {
  func.func @_mean_pooler_kernel(%arg0: i32, %arg1: i32, %arg2: memref<2x8x32xf32, #tpu.memory_space<vmem>>, %arg3: memref<2x8xf32, #tpu.memory_space<vmem>>, %arg4: memref<32x32xf32, #tpu.memory_space<vmem>>, %arg5: memref<1x32xf32, #tpu.memory_space<vmem>>, %arg6: memref<2x32xf32, #tpu.memory_space<vmem>>, %arg7: memref<2x32xf32, #tpu.memory_space<vmem>>, %arg8: memref<2x1xf32, #tpu.memory_space<vmem>>) attributes {dimension_semantics = [#tpu.dimension_semantics<parallel>, #tpu.dimension_semantics<arbitrary>], iteration_bounds = array<i64: 1, 1>, scalar_prefetch = 0 : i64, scratch_operands = 2 : i64, tpu.core_type = #tpu.core_type<tc>, window_params = [{transform_indices = @transform_0, window_bounds = array<i64: 2, 8, 32>}, {transform_indices = @transform_1, window_bounds = array<i64: 2, 8>}, {pipeline_mode = #tpu.pipeline_mode<synchronous>, transform_indices = @transform_2, window_bounds = array<i64: 32, 32>}, {pipeline_mode = #tpu.pipeline_mode<synchronous>, transform_indices = @transform_3, window_bounds = array<i64: 1, 32>}, {transform_indices = @transform_4, window_bounds = array<i64: 2, 32>}]} {
    %c0_i32 = arith.constant 0 : i32
    %0 = arith.cmpi eq, %arg1, %c0_i32 : i32
    %1 = arith.extui %0 : i1 to i32
    %c0_i32_0 = arith.constant 0 : i32
    %2 = arith.cmpi ne, %1, %c0_i32_0 : i32
    scf.if %2 {
      %cst_16 = arith.constant 0.000000e+00 : f32
      %20 = vector.broadcast %cst_16 : f32 to vector<2x32xf32>
      %c0_17 = arith.constant 0 : index
      %c0_18 = arith.constant 0 : index
      %21 = vector.load %arg7[%c0_17, %c0_18] : memref<2x32xf32, #tpu.memory_space<vmem>>, vector<2x32xf32>
      tpu.vector_store %arg7[%c0_17, %c0_18], %20 {strides = array<i32>} : memref<2x32xf32, #tpu.memory_space<vmem>>, vector<2x32xf32>,
      %cst_19 = arith.constant 0.000000e+00 : f32
      %22 = vector.broadcast %cst_19 : f32 to vector<2x1xf32>
      %c0_20 = arith.constant 0 : index
      %c0_21 = arith.constant 0 : index
      %23 = vector.load %arg8[%c0_20, %c0_21] : memref<2x1xf32, #tpu.memory_space<vmem>>, vector<2x1xf32>
      tpu.vector_store %arg8[%c0_20, %c0_21], %22 {strides = array<i32>} : memref<2x1xf32, #tpu.memory_space<vmem>>, vector<2x1xf32>,
    } else {
    }
    %c0 = arith.constant 0 : index
    %c0_1 = arith.constant 0 : index
    %c0_2 = arith.constant 0 : index
    %3 = vector.load %arg2[%c0, %c0_1, %c0_2] : memref<2x8x32xf32, #tpu.memory_space<vmem>>, vector<2x8x32xf32>
    %c0_3 = arith.constant 0 : index
    %c0_4 = arith.constant 0 : index
    %4 = vector.load %arg3[%c0_3, %c0_4] : memref<2x8xf32, #tpu.memory_space<vmem>>, vector<2x8xf32>
    %c0_5 = arith.constant 0 : index
    %c0_6 = arith.constant 0 : index
    %5 = vector.load %arg7[%c0_5, %c0_6] : memref<2x32xf32, #tpu.memory_space<vmem>>, vector<2x32xf32>
    %6 = vector.shape_cast %4 : vector<2x8xf32> to vector<2x8x1xf32>
    %7 = vector.broadcast %6 : vector<2x8x1xf32> to vector<2x8x32xf32>
    %8 = arith.mulf %3, %7 : vector<2x8x32xf32>
    %cst = arith.constant dense<0.000000e+00> : vector<2x32xf32>
    %9 = vector.multi_reduction <add>, %8, %cst [1] : vector<2x8x32xf32> to vector<2x32xf32>
    %10 = arith.addf %5, %9 : vector<2x32xf32>
    %c0_7 = arith.constant 0 : index
    %c0_8 = arith.constant 0 : index
    %11 = vector.load %arg7[%c0_7, %c0_8] : memref<2x32xf32, #tpu.memory_space<vmem>>, vector<2x32xf32>
    tpu.vector_store %arg7[%c0_7, %c0_8], %10 {strides = array<i32>} : memref<2x32xf32, #tpu.memory_space<vmem>>, vector<2x32xf32>,
    %c0_9 = arith.constant 0 : index
    %c0_10 = arith.constant 0 : index
    %12 = vector.load %arg8[%c0_9, %c0_10] : memref<2x1xf32, #tpu.memory_space<vmem>>, vector<2x1xf32>
    %cst_11 = arith.constant dense<0.000000e+00> : vector<2xf32>
    %13 = vector.multi_reduction <add>, %4, %cst_11 [1] : vector<2x8xf32> to vector<2xf32>
    %14 = vector.shape_cast %13 : vector<2xf32> to vector<2x1xf32>
    %15 = arith.addf %12, %14 : vector<2x1xf32>
    %c0_12 = arith.constant 0 : index
    %c0_13 = arith.constant 0 : index
    %16 = vector.load %arg8[%c0_12, %c0_13] : memref<2x1xf32, #tpu.memory_space<vmem>>, vector<2x1xf32>
    tpu.vector_store %arg8[%c0_12, %c0_13], %15 {strides = array<i32>} : memref<2x1xf32, #tpu.memory_space<vmem>>, vector<2x1xf32>,
    %c0_i32_14 = arith.constant 0 : i32
    %17 = arith.cmpi eq, %arg1, %c0_i32_14 : i32
    %18 = arith.extui %17 : i1 to i32
    %c0_i32_15 = arith.constant 0 : i32
    %19 = arith.cmpi ne, %18, %c0_i32_15 : i32
    scf.if %19 {
      %c0_16 = arith.constant 0 : index
      %c0_17 = arith.constant 0 : index
      %20 = vector.load %arg8[%c0_16, %c0_17] : memref<2x1xf32, #tpu.memory_space<vmem>>, vector<2x1xf32>
      %21 = math.rsqrt %20 : vector<2x1xf32>
      %c0_18 = arith.constant 0 : index
      %c0_19 = arith.constant 0 : index
      %22 = vector.load %arg7[%c0_18, %c0_19] : memref<2x32xf32, #tpu.memory_space<vmem>>, vector<2x32xf32>
      %23 = vector.broadcast %21 : vector<2x1xf32> to vector<2x32xf32>
      %24 = arith.mulf %22, %23 : vector<2x32xf32>
      %c0_20 = arith.constant 0 : index
      %c0_21 = arith.constant 0 : index
      %25 = vector.load %arg4[%c0_20, %c0_21] : memref<32x32xf32, #tpu.memory_space<vmem>>, vector<32x32xf32>
      %cst_22 = arith.constant dense<0.000000e+00> : vector<2x32xf32>
      %26 = tpu.matmul %24, %25, %cst_22 {dimension_numbers = #tpu.dot_dimension_numbers<[1], [0], [0], [1], [0, 0, 1, 1], [], []>} : vector<2x32xf32>, vector<32x32xf32>, vector<2x32xf32> -> vector<2x32xf32>
      %c0_23 = arith.constant 0 : index
      %c0_24 = arith.constant 0 : index
      %27 = vector.load %arg5[%c0_23, %c0_24] : memref<1x32xf32, #tpu.memory_space<vmem>>, vector<1x32xf32>
      %28 = vector.broadcast %27 : vector<1x32xf32> to vector<2x32xf32>
      %29 = arith.addf %26, %28 : vector<2x32xf32>
      %cst_25 = arith.constant 0.000000e+00 : f32
      %30 = vector.broadcast %cst_25 : f32 to vector<2x32xf32>
      %31 = arith.maximumf %29, %30 : vector<2x32xf32>
      %c0_26 = arith.constant 0 : index
      %c0_27 = arith.constant 0 : index
      %32 = vector.load %arg6[%c0_26, %c0_27] : memref<2x32xf32, #tpu.memory_space<vmem>>, vector<2x32xf32>
      tpu.vector_store %arg6[%c0_26, %c0_27], %31 {strides = array<i32>} : memref<2x32xf32, #tpu.memory_space<vmem>>, vector<2x32xf32>,
    } else {
    }
    return
  }
  func.func @transform_0(%arg0: i32, %arg1: i32) -> (i32, i32, i32) {
    %c0_i32 = arith.constant 0 : i32
    %c0_i32_0 = arith.constant 0 : i32
    return %arg0, %arg1, %c0_i32 : i32, i32, i32
  }
  func.func @transform_1(%arg0: i32, %arg1: i32) -> (i32, i32) {
    %c0_i32 = arith.constant 0 : i32
    return %arg0, %arg1 : i32, i32
  }
  func.func @transform_2(%arg0: i32, %arg1: i32) -> (i32, i32) {
    %c0_i32 = arith.constant 0 : i32
    %c0_i32_0 = arith.constant 0 : i32
    %c0_i32_1 = arith.constant 0 : i32
    return %c0_i32, %c0_i32_0 : i32, i32
  }
  func.func @transform_3(%arg0: i32, %arg1: i32) -> (i32, i32) {
    %c0_i32 = arith.constant 0 : i32
    %c0_i32_0 = arith.constant 0 : i32
    %c0_i32_1 = arith.constant 0 : i32
    return %c0_i32, %c0_i32_0 : i32, i32
  }
  func.func @transform_4(%arg0: i32, %arg1: i32) -> (i32, i32) {
    %c0_i32 = arith.constant 0 : i32
    %c0_i32_0 = arith.constant 0 : i32
    return %arg0, %c0_i32 : i32, i32
  }
}

</mosaic_0001>

<bundles_post_ra>
// kernel: tpu_custom_call.1
= control target key start
LH: loop header
LB: loop body
LE: loop exit
PB: predicated region body
PF: predicated region fallthrough
CT: control target
= control target key end

     0   :  { %9 = vsyncpa [#allocation5], 0  ;;  %s368_s0 = inlined_call_operand.hbm [shape: f32[2,8,32], index: 0, kind: input, shape index: {}]   ;;  %s369_s1 = inlined_call_operand.hbm [shape: f32[2,8], index: 1, kind: input, shape index: {}]   ;;  %s370_s2 = inlined_call_operand.hbm [shape: f32[32,32], index: 2, kind: input, shape index: {}]   ;;  %s371_s3 = inlined_call_operand.vmem [shape: f32[1,32], index: 3, kind: input, shape index: {}]   ;;  %s372_s4 = inlined_call_operand.hbm [shape: f32[2,32], index: 4, kind: output, shape index: {}]  }
   0x1   :  { %10 = vsyncpa [#allocation8], 0  ;;  %s30_s17 = sshll.u32 %s369_s1, 4  ;;  %s31_s17 = int_to_ptr.hbm [resolvable:$true] %s30_s17 }
   0x2   :  { %11 = vsyncpa [#allocation6], 0  ;;  %s312_s18 = smov [#allocation7]   ;;  %s16_s22 = sshll.u32 %s368_s0, 4  ;;  %s17_s22 = int_to_ptr.hbm [resolvable:$true] %s16_s22 }
   0x3   :  { %s32_s19 = sshll.u32 %s312_s18, 4  ;;  %s313_s23 = smov [#allocation4]   ;;  %s33_s19 = int_to_ptr.vmem [resolvable:$true] %s32_s19 }
   0x4   :  { %35 = dma.hbm_to_vmem [thread:$0]  %s31_s17, 32, %s33_s19, [#allocation8]  }
   0x5   :  { %s18_s24 = sshll.u32 %s313_s23, 4  ;;  %s314_s25 = smov 128   ;;  %s19_s24 = int_to_ptr.vmem [resolvable:$true] %s18_s24 }
   0x6   :  { %s315_s26 = smov 8   ;;  %s40_s1 = sshll.u32 %s370_s2, 4  ;;  %s41_s1 = int_to_ptr.hbm [resolvable:$true] %s40_s1 }
   0x7   :  { %24 = dma.hbm_to_vmem [thread:$0]  %s17_s22, 256, %s19_s24, [#allocation5], %s314_s25, %s314_s25, %s315_s26  }
   0x8   :  { %s316_s29 = smov [#allocation9]  }
   0x9   :  { %s42_s30 = sshll.u32 %s316_s29, 4  ;;  %s43_s30 = int_to_ptr.vmem [resolvable:$true] %s42_s30 }
   0xa   :  { %48 = dma.hbm_to_vmem [thread:$0]  %s41_s1, 512, %s43_s30, [#allocation8], %s314_s25, %s314_s25, %s315_s26  }
   0xb   :  { %306 = dma.done.wait [#allocation5], 256  }
   0xc   :  { %307 = vsyncadd [#allocation5], 4294967040 }
   0xd   :  { %308 = dma.done.wait [#allocation8], 544  }
   0xe   :  { %309 = vsyncadd [#allocation8], 4294966752  ;;  %v76_v0 = vlaneseq  ;;  %vm67_vm0 = vcmask 254976   ;;  %vm69_vm1 = vcmask 1024   ;;  %v317_v1 = vmov 0.0   ;;  %v146_v8 = vld [vmem:[#allocation9 + $0x18] sm:$0xff] }
   0xf   :  { %68 = vst.msk [vmem:[#allocation2] sm:$0x3] %vm67_vm0, %v317_v1  ;;  %vm115_vm2 = vcmask 58368   ;;  %v73_v3 = vld [vmem:[#allocation7] sm:$0x3]  ;;  %v318_v7 = vmov 0   ;;  %166 = vmatpush.msra.mxu0 %v146_v8 }
  0x10   :  { %v77_v2 = vshrl.u32 %v76_v0, 7  ;;  %70 = vst.msk [vmem:[#allocation3] sm:$0x3] %vm69_vm1, %v317_v1  ;;  %v116_v4 = vsel %vm115_vm2, %v73_v3, 0.0  ;;  %v82_v5 = vperm.slane %v73_v3, 1  ;;  %v75_v6 = vperm.slane %v73_v3, 0 }
  0x11   :  { %117 = vadd.xlane.f32.xlu0 %v116_v4  ;;  %v145_v10 = vld [vmem:[#allocation9 + $0x10] sm:$0xff]  ;;  %v144_v11 = vld [vmem:[#allocation9 + $0x8] sm:$0xff]  ;;  %vm91_vm6 = vcmask 261120   ;;  %vm108_vm7 = vcmask 1041409   ;;  %v143_v45 = vld [vmem:[#allocation9] sm:$0xff]  ;;  %s319_s5 = smov [#allocation10]  }
  0x12   :  { %204 = vset.pattern.permute.xlu1 %v77_v2  ;;  %203 = vset.pattern.permute.xlu0 %v77_v2  ;;  %v72_v23 = vld [vmem:[#allocation4 + $0x8] sm:$0xff]  ;;  %v71_v25 = vld [vmem:[#allocation4] sm:$0xff]  ;;  %v207_v49 = vld [vmem:[%s371_s3] ss:$0 sm:$0xff]  ;;  %s181_s6 = sshll.u32 %s319_s5, 4  ;;  %s183_s9 = sshll.u32 %s372_s4, 4  ;;  %s182_s6 = int_to_ptr.vmem [resolvable:$true] %s181_s6  ;;  %s184_s9 = int_to_ptr.hbm [resolvable:$true] %s183_s9 }
  0x13   :  { %167 = vmatpush.msra.mxu0 %v145_v10 }
  0x15   :  { %168 = vmatpush.msra.mxu0 %v144_v11 }
  0x16   :  { %v74_v43 = vld [vmem:[#allocation2] sm:$0x3] }
  0x17   :  { %v114_v9 = vld [vmem:[#allocation3] sm:$0x3]  ;;  %169 = vmatpush.msra.mxu0 %v143_v45 }
  0x1a   :  { %87 = vperm.xlu1 %204, %v82_v5  }
  0x22   :  { %205 = vset.pattern.permute.xlu1 %v318_v7 }
  0x25   :  { %80 = vperm.xlu0 %203, %v75_v6  }
  0x2d   :  { %206 = vset.pattern.permute.xlu0 %v318_v7 }
  0x84   :  { %v118_v12 = vpop.xlane.xlu0 %117 }
  0x85   :  { %v119_v13 = vadd.f32 %v118_v12, %v114_v9 }
  0x87   :  { %121 = vst.msk [vmem:[#allocation3] sm:$0x3] %vm69_vm1, %v119_v13 }
  0x8c   :  { %v88_v22 = vpop.permute.xlu1 %87 }
  0x8d   :  { %v90_v26 = vmul.f32 %v88_v22, %v72_v23 }
  0x8e   :  { %v125_v14 = vld [vmem:[#allocation3] sm:$0x3] }
  0x8f   :  { %208 = vrsqrt.f32 %v125_v14  ;;  %vm132_vm4 = vweird.f32 %v125_v14  ;;  %v99_v29 = vsel %vm91_vm6, %v90_v26, 0.0 }
  0x90   :  { %v100_v31 = vrot.slane %v99_v29, 4 }
  0x92   :  { %v101_v33 = vadd.f32 %v100_v31, %v99_v29 }
  0x94   :  { %v102_v35 = vrot.slane %v101_v33, 2 }
  0x95   :  { %v209_v15 = vpop.eup %208 }
  0x96   :  { %v127_v16 = vmul.f32 %v209_v15, %v125_v14  ;;  %vm133_vm3 = vweird.f32 %v209_v15  ;;  %v103_v37 = vadd.f32 %v102_v35, %v101_v33 }
  0x97   :  { %vm134_vm5 = vmor %vm132_vm4, %vm133_vm3  ;;  %v81_v24 = vpop.permute.xlu0 %80 }
  0x98   :  { %v128_v17 = vmul.f32 %v209_v15, %v127_v16  ;;  %v89_v27 = vmul.f32 %v81_v24, %v71_v25  ;;  %v104_v39 = vrot.slane %v103_v37, 1 }
  0x9a   :  { %v129_v18 = vmul.f32 0.5, %v128_v17  ;;  %v92_v28 = vsel %vm91_vm6, %v89_v27, 0.0  ;;  %v105_v41 = vadd.f32 %v104_v39, %v103_v37 }
  0x9b   :  { %v93_v30 = vrot.slane %v92_v28, 4 }
  0x9c   :  { %v130_v19 = vsub.f32 1.5, %v129_v18 }
  0x9d   :  { %v94_v32 = vadd.f32 %v93_v30, %v92_v28 }
  0x9e   :  { %v131_v20 = vmul.f32 %v209_v15, %v130_v19 }
  0x9f   :  { %v95_v34 = vrot.slane %v94_v32, 2 }
  0xa0   :  { %v135_v21 = vsel %vm134_vm5, %v209_v15, %v131_v20 }
  0xa1   :  { %139 = vperm.xlu1 %205, %v135_v21   ;;  %v96_v36 = vadd.f32 %v95_v34, %v94_v32 }
  0xa3   :  { %v97_v38 = vrot.slane %v96_v36, 1 }
  0xa5   :  { %v98_v40 = vadd.f32 %v97_v38, %v96_v36 }
  0xa7   :  { %v109_v42 = vsel %vm108_vm7, %v105_v41, %v98_v40 }
  0xa8   :  { %v111_v44 = vadd.f32 %v109_v42, %v74_v43 }
  0xaa   :  { %113 = vst.msk [vmem:[#allocation2] sm:$0x3] %vm67_vm0, %v111_v44 }
  0xb1   :  { %v136_v47 = vld [vmem:[#allocation2] sm:$0x3] }
 0x113   :  { %v140_v46 = vpop.permute.xlu1 %139 }
 0x114   :  { %v142_v48 = vmul.f32 %v140_v46, %v136_v47 }
 0x116   :  { %194 = vmatmul.msk.f32.vlgmr.msra.gmra.mxu0 %vm91_vm6, %v142_v48 }
 0x193   :  { %v171_v50 = vpop.f32.mrf.mxu0 }
 0x194   :  { %v172_v51 = vadd.f32 %v207_v49, %v171_v50 }
 0x196   :  { %v174_v52 = vmax.f32 %v172_v51, 0.0 }
 0x198   :  { %175 = vst.msk [vmem:[#allocation10] sm:$0x3] %vm67_vm0, %v174_v52 }
 0x199   :  { %186 = dma.vmem_to_hbm [thread:$0]  %s182_s6, 32, %s184_s9, [#allocation6]  }
 0x19a   :  { %310 = dma.done.wait [#allocation6], 32  }
 0x19b   :  { %311 = vsyncadd [#allocation6], 4294967264 }
 0x19c   :  { %191 = vsyncpa [#allocation5], 1 }
 0x19d   :  { %192 = vsyncpa [#allocation8], 1 }
 0x19e   :  { %193 = vsyncpa [#allocation6], 1 }

</bundles_post_ra>
